<compile_context>
chip_gen: v7x
topology: tpu7x:2x2x1
jax: 0.10.0
libtpu: 0.0.40
codegen_flags: <defaults>
</compile_context>

<pallas_src>
import jax
import jax.numpy as jnp
from jax.experimental import pallas as pl
from jax.experimental.pallas import tpu as pltpu


def rope_kernel(x_ref, cos_ref, sin_ref, o_ref):
    # x_ref: (TB, TS, D) tile; cos/sin: (TS, D) f32 tiles (sin has sign folded).
    x = x_ref[...].astype(jnp.float32)
    d = x.shape[-1]
    # roll toward higher indices by d/2: result = [x2, x1] along the lane axis.
    rot = pltpu.roll(x, shift=d // 2, axis=x.ndim - 1)
    cos = cos_ref[...][None, :, :]
    sin = sin_ref[...][None, :, :]        # already [-sin(ang), sin(ang)]
    o_ref[...] = (x * cos + rot * sin).astype(o_ref.dtype)


def _pick_tiles(bh, s, d, itemsize, target_bytes=2 * 1024 * 1024):
    """Pick (TB, TS): divisors of (B*H, S) keeping one x tile <= target_bytes.

    TS must be a multiple of the sublane tile (8 for 32-bit, 16 for 16-bit, ...)
    unless it equals the full S extent (Pallas (8,128) block rule).
    """
    sublane = 8 * max(1, 4 // max(1, itemsize))
    row_bytes = d * itemsize
    if s * row_bytes <= target_bytes:
        ts = s
    else:
        ts = s  # fallback: full extent is always legal
        limit = max(sublane, target_bytes // row_bytes)
        best = 0
        for cand in range(sublane, s + 1, sublane):
            if s % cand == 0 and cand <= limit:
                best = cand
        if best:
            ts = best
    tile_rows_bytes = ts * row_bytes
    tb = 1
    for cand in range(1, bh + 1):
        if bh % cand == 0 and cand * tile_rows_bytes <= target_bytes:
            tb = cand
    return tb, ts


def rotary_embedding(x, base=10000.0):
    """Apply rotary position embedding. x: [B, H, S, D] (D even)."""
    B, H, S, D = x.shape
    assert D % 2 == 0, "head_dim must be even for RoPE"
    BH = B * H

    # --- glue: build f32 cos / signed-sin tables in plain JAX ---------------
    pos = jnp.arange(S, dtype=jnp.float32)
    inv_freq = 1.0 / (base ** (jnp.arange(0, D, 2, dtype=jnp.float32) / D))
    ang = pos[:, None] * inv_freq[None, :]                       # (S, D/2)
    cos = jnp.concatenate([jnp.cos(ang), jnp.cos(ang)], -1)      # (S, D) f32
    sin_signed = jnp.concatenate([-jnp.sin(ang), jnp.sin(ang)], -1)  # (S, D) f32

    xf = x.reshape(BH, S, D)
    itemsize = jnp.dtype(x.dtype).itemsize
    TB, TS = _pick_tiles(BH, S, D, itemsize)

    # VMEM budget: 2*(x tile + out tile) + 2*(cos + sin tiles) with ~2 MiB
    # x tiles stays well under the default scoped-VMEM limit on all chips,
    # so no vmem_limit_bytes override is needed.
    out = pl.pallas_call(
        rope_kernel,
        out_shape=jax.ShapeDtypeStruct((BH, S, D), x.dtype),
        grid_spec=pltpu.PrefetchScalarGridSpec(
            num_scalar_prefetch=0,
            grid=(BH // TB, S // TS),
            in_specs=[
                pl.BlockSpec((TB, TS, D), lambda i, s: (i, s, 0)),  # x tile
                pl.BlockSpec((TS, D), lambda i, s: (s, 0)),         # cos tile
                pl.BlockSpec((TS, D), lambda i, s: (s, 0)),         # signed sin
            ],
            out_specs=pl.BlockSpec((TB, TS, D), lambda i, s: (i, s, 0)),
        ),
        compiler_params=pltpu.CompilerParams(
            dimension_semantics=("parallel", "parallel")),
    )(xf, cos, sin_signed)

    return out.reshape(B, H, S, D)


def rotary_embedding_ref(x, base=10000.0):
    """Pure-JAX reference for correctness checking (f32 math, cast at end)."""
    B, H, S, D = x.shape
    pos = jnp.arange(S, dtype=jnp.float32)
    inv_freq = 1.0 / (base ** (jnp.arange(0, D, 2, dtype=jnp.float32) / D))
    ang = pos[:, None] * inv_freq[None, :]
    cos = jnp.concatenate([jnp.cos(ang), jnp.cos(ang)], -1)[None, None]
    sin = jnp.concatenate([jnp.sin(ang), jnp.sin(ang)], -1)[None, None]
    xf = x.astype(jnp.float32)
    x1, x2 = xf[..., : D // 2], xf[..., D // 2:]
    rot = jnp.concatenate([-x2, x1], axis=-1)
    return (xf * cos + rot * sin).astype(x.dtype)


if __name__ == "__main__":
    key = jax.random.PRNGKey(0)
    B, H, S, D = 2, 4, 16, 32
    x = jax.random.normal(key, (B, H, S, D), dtype=jnp.float32)

    out = rotary_embedding(x)
    out = jax.block_until_ready(out)

    ref = rotary_embedding_ref(x)
    assert out.shape == (B, H, S, D)
    assert jnp.allclose(out, ref, atol=1e-5, rtol=1e-5), "mismatch vs reference"

    print("KERNEL_OK")
</pallas_src>

<mosaic_0001>
module attributes {stable_mosaic.version = 11 : i64} {
  func.func @rope_kernel(%arg0: i32, %arg1: i32, %arg2: memref<8x16x32xf32, #tpu.memory_space<vmem>>, %arg3: memref<16x32xf32, #tpu.memory_space<vmem>>, %arg4: memref<16x32xf32, #tpu.memory_space<vmem>>, %arg5: memref<8x16x32xf32, #tpu.memory_space<vmem>>) attributes {dimension_semantics = [#tpu.dimension_semantics<parallel>, #tpu.dimension_semantics<parallel>], iteration_bounds = array<i64: 1, 1>, scalar_prefetch = 0 : i64, scratch_operands = 0 : i64, tpu.core_type = #tpu.core_type<tc>, window_params = [{transform_indices = @transform_0, window_bounds = array<i64: 8, 16, 32>}, {transform_indices = @transform_1, window_bounds = array<i64: 16, 32>}, {transform_indices = @transform_2, window_bounds = array<i64: 16, 32>}, {transform_indices = @transform_3, window_bounds = array<i64: 8, 16, 32>}]} {
    %c0 = arith.constant 0 : index
    %c0_0 = arith.constant 0 : index
    %c0_1 = arith.constant 0 : index
    %0 = vector.load %arg2[%c0, %c0_0, %c0_1] : memref<8x16x32xf32, #tpu.memory_space<vmem>>, vector<8x16x32xf32>
    %c16_i32 = arith.constant 16 : i32
    %1 = tpu.dynamic_rotate %0 by %c16_i32 dim 2 : vector<8x16x32xf32>, i32 -> vector<8x16x32xf32>
    %c0_2 = arith.constant 0 : index
    %c0_3 = arith.constant 0 : index
    %2 = vector.load %arg3[%c0_2, %c0_3] : memref<16x32xf32, #tpu.memory_space<vmem>>, vector<16x32xf32>
    %3 = vector.shape_cast %2 : vector<16x32xf32> to vector<1x16x32xf32>
    %c0_4 = arith.constant 0 : index
    %c0_5 = arith.constant 0 : index
    %4 = vector.load %arg4[%c0_4, %c0_5] : memref<16x32xf32, #tpu.memory_space<vmem>>, vector<16x32xf32>
    %5 = vector.shape_cast %4 : vector<16x32xf32> to vector<1x16x32xf32>
    %6 = vector.broadcast %3 : vector<1x16x32xf32> to vector<8x16x32xf32>
    %7 = arith.mulf %0, %6 : vector<8x16x32xf32>
    %8 = vector.broadcast %5 : vector<1x16x32xf32> to vector<8x16x32xf32>
    %9 = arith.mulf %1, %8 : vector<8x16x32xf32>
    %10 = arith.addf %7, %9 : vector<8x16x32xf32>
    %c0_6 = arith.constant 0 : index
    %c0_7 = arith.constant 0 : index
    %c0_8 = arith.constant 0 : index
    %11 = vector.load %arg5[%c0_6, %c0_7, %c0_8] : memref<8x16x32xf32, #tpu.memory_space<vmem>>, vector<8x16x32xf32>
    tpu.vector_store %arg5[%c0_6, %c0_7, %c0_8], %10 {strides = array<i32>} : memref<8x16x32xf32, #tpu.memory_space<vmem>>, vector<8x16x32xf32>,
    return
  }
  func.func @transform_0(%arg0: i32, %arg1: i32) -> (i32, i32, i32) {
    %c0_i32 = arith.constant 0 : i32
    %c0_i32_0 = arith.constant 0 : i32
    return %arg0, %arg1, %c0_i32 : i32, i32, i32
  }
  func.func @transform_1(%arg0: i32, %arg1: i32) -> (i32, i32) {
    %c0_i32 = arith.constant 0 : i32
    %c0_i32_0 = arith.constant 0 : i32
    return %arg1, %c0_i32 : i32, i32
  }
  func.func @transform_2(%arg0: i32, %arg1: i32) -> (i32, i32) {
    %c0_i32 = arith.constant 0 : i32
    %c0_i32_0 = arith.constant 0 : i32
    return %arg1, %c0_i32 : i32, i32
  }
  func.func @transform_3(%arg0: i32, %arg1: i32) -> (i32, i32, i32) {
    %c0_i32 = arith.constant 0 : i32
    %c0_i32_0 = arith.constant 0 : i32
    return %arg0, %arg1, %c0_i32 : i32, i32, i32
  }
}

</mosaic_0001>

<bundles_post_ra>
// kernel: tpu_custom_call.1
= control target key start
LH: loop header
LB: loop body
LE: loop exit
PB: predicated region body
PF: predicated region fallthrough
CT: control target
= control target key end

     0   :  { %8 = vsyncpa [#allocation3], 0  ;;  %s719_s0 = inlined_call_operand.hbm [shape: f32[8,16,32], index: 0, kind: input, shape index: {}]   ;;  %s720_s1 = inlined_call_operand.hbm [shape: f32[16,32], index: 1, kind: input, shape index: {}]   ;;  %s721_s2 = inlined_call_operand.hbm [shape: f32[16,32], index: 2, kind: input, shape index: {}]   ;;  %s722_s3 = inlined_call_operand.hbm [shape: f32[8,16,32], index: 3, kind: output, shape index: {}]  }
   0x1   :  { %9 = vsyncpa [#allocation6], 0 }
   0x2   :  { %10 = vsyncpa [#allocation4], 0  ;;  %s431_s12 = smov [#allocation5]   ;;  %s432_s14 = smov [#allocation2]  }
   0x3   :  { %s28_s13 = sshll.u32 %s431_s12, 4  ;;  %s16_s15 = sshll.u32 %s432_s14, 4  ;;  %s29_s13 = int_to_ptr.vmem [resolvable:$true] %s28_s13  ;;  %s460_s15 = int_to_ptr.vmem [resolvable:$true] %s16_s15 }
   0x4   :  { %s337_s18 = scalar_lea.hbm %s720_s1, 256 }
   0x5   :  { %p338_p0 = scmp.ne.s32.totalorder %s720_s1, %s337_s18  ;;  %p341_p1 = scmp.lt.u32.totalorder %s337_s18, %s720_s1 }
   0x7   :  { %p343_p2 = pnand %p341_p1, %p338_p0 }
   0x9   :  { %346 = shalt.err (!%p343_p2)
}
   0xa   :  { %s347_s23 = scalar_lea.vmem %s29_s13, 256  ;;  %p352_p4 = scmp.lt.s32.totalorder %s29_s13, %s29_s13 }
   0xb   :  { %p348_p3 = scmp.ne.s32.totalorder %s29_s13, %s347_s23  ;;  %p353_p5 = scmp.lt.s32.totalorder %s347_s23, %s347_s23 }
   0xd   :  { %p354_p6 = por %p353_p5, %p352_p4 }
   0xf   :  { %p355_p7 = pnand %p354_p6, %p348_p3 }
  0x11   :  { %358 = shalt.err (!%p355_p7)
}
  0x12   :  { %s433_s24 = smov 128   ;;  %s434_s25 = smov 8  }
  0x13   :  { %34 = dma.hbm_to_vmem [thread:$0]  %s720_s1, 256, %s29_s13, [#allocation6], %s433_s24, %s433_s24, %s434_s25  }
  0x14   :  { %s359_s30 = scalar_lea.hbm %s719_s0, 2048 }
  0x15   :  { %p360_p8 = scmp.ne.s32.totalorder %s719_s0, %s359_s30  ;;  %p363_p9 = scmp.lt.u32.totalorder %s359_s30, %s719_s0 }
  0x17   :  { %p365_p10 = pnand %p363_p9, %p360_p8 }
  0x19   :  { %368 = shalt.err (!%p365_p10)
}
  0x1a   :  { %s369_s8 = scalar_lea.vmem %s460_s15, 2048  ;;  %p374_p12 = scmp.lt.s32.totalorder %s460_s15, %s460_s15 }
  0x1b   :  { %p370_p11 = scmp.ne.s32.totalorder %s460_s15, %s369_s8  ;;  %p375_p13 = scmp.lt.s32.totalorder %s369_s8, %s369_s8 }
  0x1d   :  { %p376_p0 = por %p375_p13, %p374_p12 }
  0x1f   :  { %p377_p1 = pnand %p376_p0, %p370_p11 }
  0x21   :  { %380 = shalt.err (!%p377_p1)
}
  0x22   :  { %22 = dma.hbm_to_vmem [thread:$0]  %s719_s0, 2048, %s460_s15, [#allocation3], %s433_s24, %s433_s24, %s434_s25  }
  0x23   :  { %s435_s10 = smov [#allocation7]   ;;  %s381_s14 = scalar_lea.hbm %s721_s2, 256 }
  0x24   :  { %s40_s11 = sshll.u32 %s435_s10, 4  ;;  %p382_p2 = scmp.ne.s32.totalorder %s721_s2, %s381_s14  ;;  %s41_s11 = int_to_ptr.vmem [resolvable:$true] %s40_s11 }
  0x25   :  { %p385_p3 = scmp.lt.u32.totalorder %s381_s14, %s721_s2 }
  0x27   :  { %p387_p4 = pnand %p385_p3, %p382_p2 }
  0x29   :  { %390 = shalt.err (!%p387_p4)
}
  0x2a   :  { %s391_s20 = scalar_lea.vmem %s41_s11, 256  ;;  %p396_p6 = scmp.lt.s32.totalorder %s41_s11, %s41_s11 }
  0x2b   :  { %p392_p5 = scmp.ne.s32.totalorder %s41_s11, %s391_s20  ;;  %p397_p7 = scmp.lt.s32.totalorder %s391_s20, %s391_s20 }
  0x2d   :  { %p398_p8 = por %p397_p7, %p396_p6 }
  0x2f   :  { %p399_p9 = pnand %p398_p8, %p392_p5 }
  0x31   :  { %402 = shalt.err (!%p399_p9)
}
  0x32   :  { %46 = dma.hbm_to_vmem [thread:$0]  %s721_s2, 256, %s41_s11, [#allocation6], %s433_s24, %s433_s24, %s434_s25  }
  0x33   :  { %425 = dma.done.wait [#allocation3], 2048  }
  0x34   :  { %426 = vsyncadd [#allocation3], 4294965248 }
  0x35   :  { %427 = dma.done.wait [#allocation6], 512  }
  0x36   :  { %428 = vsyncadd [#allocation6], 4294966784  ;;  %v512_v0 = vld [vmem:[#allocation2] sm:$0xff]  ;;  %v514_v1 = vld [vmem:[#allocation2 + $0x10] sm:$0xff]  ;;  %s436_s21 = smov 32   ;;  %vm72_vm0 = vcmask 1047808  }
  0x37   :  { %73 = vrot.lane.b32.xlu0 %v512_v0, %s436_s21  ;;  %79 = vrot.lane.b32.xlu1 %v514_v1, %s436_s21  ;;  %v520_v2 = vld [vmem:[#allocation2 + $0x8] sm:$0xff]  ;;  %v522_v3 = vld [vmem:[#allocation2 + $0x18] sm:$0xff]  ;;  %v528_v4 = vld [vmem:[#allocation2 + $0x20] sm:$0xff]  ;;  %s437_s2 = smov 16   ;;  %s438_s22 = smov 112   ;;  %vm293_vm1 = vcmask 261120  }
  0x38   :  { %v530_v5 = vld [vmem:[#allocation2 + $0x28] sm:$0xff]  ;;  %v536_v6 = vld [vmem:[#allocation2 + $0x30] sm:$0xff]  ;;  %v538_v7 = vld [vmem:[#allocation2 + $0x38] sm:$0xff]  ;;  %s439_s23 = smov [#allocation8]  }
  0x39   :  { %v544_v8 = vld [vmem:[#allocation2 + $0x40] sm:$0xff]  ;;  %v546_v9 = vld [vmem:[#allocation2 + $0x48] sm:$0xff]  ;;  %v552_v10 = vld [vmem:[#allocation2 + $0x50] sm:$0xff]  ;;  %s315_s26 = sshll.u32 %s439_s23, 4  ;;  %s316_s26 = int_to_ptr.vmem [resolvable:$true] %s315_s26 }
  0x3a   :  { %v554_v11 = vld [vmem:[#allocation2 + $0x58] sm:$0xff]  ;;  %v560_v12 = vld [vmem:[#allocation2 + $0x60] sm:$0xff]  ;;  %v562_v13 = vld [vmem:[#allocation2 + $0x68] sm:$0xff]  ;;  %s403_s27 = scalar_lea.vmem %s316_s26, 2048  ;;  %p408_p11 = scmp.lt.s32.totalorder %s316_s26, %s316_s26 }
  0x3b   :  { %76 = vrot.lane.b32.xlu0 %v520_v2, %s436_s21  ;;  %82 = vrot.lane.b32.xlu1 %v522_v3, %s436_s21  ;;  %v568_v14 = vld [vmem:[#allocation2 + $0x70] sm:$0xff]  ;;  %v570_v15 = vld [vmem:[#allocation2 + $0x78] sm:$0xff]  ;;  %p404_p10 = scmp.ne.s32.totalorder %s316_s26, %s403_s27  ;;  %p409_p12 = scmp.lt.s32.totalorder %s403_s27, %s403_s27 }
  0x3c   :  { %v171_v48 = vld [vmem:[#allocation7] sm:$0xff]  ;;  %v172_v49 = vld [vmem:[#allocation7 + $0x8] sm:$0xff] }
  0x3d   :  { %p410_p13 = por %p409_p12, %p408_p11 }
  0x3f   :  { %85 = vrot.lane.b32.xlu0 %v528_v4, %s436_s21  ;;  %88 = vrot.lane.b32.xlu1 %v530_v5, %s436_s21  ;;  %p411_p0 = pnand %p410_p13, %p404_p10 }
  0x43   :  { %91 = vrot.lane.b32.xlu0 %v536_v6, %s436_s21  ;;  %94 = vrot.lane.b32.xlu1 %v538_v7, %s436_s21 }
  0x47   :  { %97 = vrot.lane.b32.xlu0 %v544_v8, %s436_s21  ;;  %100 = vrot.lane.b32.xlu1 %v546_v9, %s436_s21 }
  0x4b   :  { %103 = vrot.lane.b32.xlu0 %v552_v10, %s436_s21  ;;  %106 = vrot.lane.b32.xlu1 %v554_v11, %s436_s21 }
  0x4f   :  { %109 = vrot.lane.b32.xlu0 %v560_v12, %s436_s21  ;;  %112 = vrot.lane.b32.xlu1 %v562_v13, %s436_s21 }
  0x53   :  { %115 = vrot.lane.b32.xlu0 %v568_v14, %s436_s21  ;;  %118 = vrot.lane.b32.xlu1 %v570_v15, %s436_s21 }
  0xa9   :  { %v74_v16 = vpop.permute.xlu0 %73  ;;  %v80_v17 = vpop.permute.xlu1 %79 }
  0xaa   :  { %v75_v18 = vsel %vm72_vm0, %v74_v16, %v512_v0  ;;  %v81_v19 = vsel %vm72_vm0, %v80_v17, %v514_v1 }
  0xab   :  { %121 = vrot.lane.b32.xlu0 %v75_v18, %s436_s21 }
  0xad   :  { %v77_v20 = vpop.permute.xlu0 %76  ;;  %v83_v21 = vpop.permute.xlu1 %82 }
  0xae   :  { %v78_v22 = vsel %vm72_vm0, %v77_v20, %v520_v2  ;;  %v84_v23 = vsel %vm72_vm0, %v83_v21, %v522_v3 }
  0xaf   :  { %125 = vrot.lane.b32.xlu0 %v81_v19, %s436_s21  ;;  %123 = vrot.lane.b32.xlu1 %v78_v22, %s436_s21 }
  0xb1   :  { %v86_v24 = vpop.permute.xlu0 %85  ;;  %v89_v25 = vpop.permute.xlu1 %88 }
  0xb2   :  { %v87_v26 = vsel %vm72_vm0, %v86_v24, %v528_v4  ;;  %v90_v27 = vsel %vm72_vm0, %v89_v25, %v530_v5 }
  0xb3   :  { %127 = vrot.lane.b32.xlu1 %v84_v23, %s436_s21  ;;  %129 = vrot.lane.b32.xlu0 %v87_v26, %s436_s21 }
  0xb5   :  { %v92_v28 = vpop.permute.xlu0 %91  ;;  %v95_v29 = vpop.permute.xlu1 %94 }
  0xb6   :  { %v93_v30 = vsel %vm72_vm0, %v92_v28, %v536_v6  ;;  %v96_v31 = vsel %vm72_vm0, %v95_v29, %v538_v7 }
  0xb7   :  { %131 = vrot.lane.b32.xlu1 %v90_v27, %s436_s21  ;;  %133 = vrot.lane.b32.xlu0 %v93_v30, %s436_s21 }
  0xb9   :  { %v98_v32 = vpop.permute.xlu0 %97  ;;  %v101_v33 = vpop.permute.xlu1 %100 }
  0xba   :  { %v99_v34 = vsel %vm72_vm0, %v98_v32, %v544_v8  ;;  %v102_v35 = vsel %vm72_vm0, %v101_v33, %v546_v9 }
  0xbb   :  { %135 = vrot.lane.b32.xlu1 %v96_v31, %s436_s21  ;;  %137 = vrot.lane.b32.xlu0 %v99_v34, %s436_s21 }
  0xbd   :  { %v104_v36 = vpop.permute.xlu0 %103  ;;  %v107_v37 = vpop.permute.xlu1 %106 }
  0xbe   :  { %v105_v38 = vsel %vm72_vm0, %v104_v36, %v552_v10  ;;  %v108_v39 = vsel %vm72_vm0, %v107_v37, %v554_v11 }
  0xbf   :  { %139 = vrot.lane.b32.xlu1 %v102_v35, %s436_s21  ;;  %141 = vrot.lane.b32.xlu0 %v105_v38, %s436_s21 }
  0xc1   :  { %v110_v40 = vpop.permute.xlu0 %109  ;;  %v113_v41 = vpop.permute.xlu1 %112 }
  0xc2   :  { %v111_v42 = vsel %vm72_vm0, %v110_v40, %v560_v12  ;;  %v114_v43 = vsel %vm72_vm0, %v113_v41, %v562_v13 }
  0xc3   :  { %143 = vrot.lane.b32.xlu1 %v108_v39, %s436_s21  ;;  %145 = vrot.lane.b32.xlu0 %v111_v42, %s436_s21 }
  0xc5   :  { %v116_v44 = vpop.permute.xlu0 %115  ;;  %v119_v45 = vpop.permute.xlu1 %118 }
  0xc6   :  { %v117_v46 = vsel %vm72_vm0, %v116_v44, %v568_v14  ;;  %v120_v47 = vsel %vm72_vm0, %v119_v45, %v570_v15 }
  0xc7   :  { %147 = vrot.lane.b32.xlu1 %v114_v43, %s436_s21  ;;  %149 = vrot.lane.b32.xlu0 %v117_v46, %s436_s21 }
  0xcb   :  { %151 = vrot.lane.b32.xlu1 %v120_v47, %s436_s21  ;;  %191 = vrot.lane.b32.xlu0 %v171_v48, %s437_s2 }
  0xcf   :  { %193 = vrot.lane.b32.xlu1 %v172_v49, %s437_s2 }
 0x11d   :  { %v122_v50 = vpop.permute.xlu0 %121 }
 0x11e   :  { %v153_v17 = vsel %vm72_vm0, %v122_v50, %v512_v0 }
 0x121   :  { %v124_v51 = vpop.permute.xlu1 %123  ;;  %v126_v52 = vpop.permute.xlu0 %125 }
 0x122   :  { %v154_v21 = vsel %vm72_vm0, %v124_v51, %v520_v2  ;;  %v155_v22 = vsel %vm72_vm0, %v126_v52, %v514_v1  ;;  %v169_v52 = vld [vmem:[#allocation5] sm:$0xff] }
 0x125   :  { %v128_v53 = vpop.permute.xlu1 %127  ;;  %v130_v54 = vpop.permute.xlu0 %129 }
 0x126   :  { %v156_v26 = vsel %vm72_vm0, %v128_v53, %v522_v3  ;;  %v157_v27 = vsel %vm72_vm0, %v130_v54, %v528_v4  ;;  %v173_v53 = vmul.f32 %v169_v52, %v512_v0  ;;  %v170_v54 = vld [vmem:[#allocation5 + $0x8] sm:$0xff] }
 0x129   :  { %v132_v55 = vpop.permute.xlu1 %131  ;;  %v134_v56 = vpop.permute.xlu0 %133 }
 0x12a   :  { %v158_v30 = vsel %vm72_vm0, %v132_v55, %v530_v5  ;;  %v159_v31 = vsel %vm72_vm0, %v134_v56, %v536_v6 }
 0x12d   :  { %v136_v57 = vpop.permute.xlu1 %135  ;;  %v138_v58 = vpop.permute.xlu0 %137 }
 0x12e   :  { %v160_v34 = vsel %vm72_vm0, %v136_v57, %v538_v7  ;;  %v161_v35 = vsel %vm72_vm0, %v138_v58, %v544_v8  ;;  %v174_v57 = vmul.f32 %v170_v54, %v520_v2  ;;  %v175_v58 = vmul.f32 %v169_v52, %v514_v1 }
 0x12f   :  { %v178_v1 = vmul.f32 %v170_v54, %v530_v5 }
 0x131   :  { %v140_v59 = vpop.permute.xlu1 %139  ;;  %v142_v60 = vpop.permute.xlu0 %141 }
 0x132   :  { %v162_v38 = vsel %vm72_vm0, %v140_v59, %v546_v9  ;;  %v163_v39 = vsel %vm72_vm0, %v142_v60, %v552_v10 }
 0x135   :  { %v144_v61 = vpop.permute.xlu1 %143  ;;  %v146_v62 = vpop.permute.xlu0 %145 }
 0x136   :  { %v164_v42 = vsel %vm72_vm0, %v144_v61, %v554_v11  ;;  %v165_v43 = vsel %vm72_vm0, %v146_v62, %v560_v12 }
 0x139   :  { %v148_v63 = vpop.permute.xlu1 %147  ;;  %v150_v16 = vpop.permute.xlu0 %149 }
 0x13a   :  { %v167_v46 = vsel %vm72_vm0, %v150_v16, %v568_v14  ;;  %v166_v47 = vsel %vm72_vm0, %v148_v63, %v562_v13  ;;  %v176_v63 = vmul.f32 %v170_v54, %v522_v3  ;;  %v177_v16 = vmul.f32 %v169_v52, %v528_v4 }
 0x13d   :  { %v152_v18 = vpop.permute.xlu1 %151  ;;  %v192_v19 = vpop.permute.xlu0 %191 }
 0x13e   :  { %v197_v20 = vmul.f32 %v192_v19, %v153_v17  ;;  %v199_v25 = vmul.f32 %v192_v19, %v155_v22  ;;  %v201_v29 = vmul.f32 %v192_v19, %v157_v27  ;;  %v203_v33 = vmul.f32 %v192_v19, %v159_v31 }
 0x13f   :  { %v205_v37 = vmul.f32 %v192_v19, %v161_v35  ;;  %v207_v41 = vmul.f32 %v192_v19, %v163_v39  ;;  %v209_v45 = vmul.f32 %v192_v19, %v165_v43  ;;  %v211_v49 = vmul.f32 %v192_v19, %v167_v46 }
 0x140   :  { %229 = vrot.lane.b32.xlu0 %v197_v20, %s438_s22  ;;  %v168_v50 = vsel %vm72_vm0, %v152_v18, %v570_v15  ;;  %v179_v19 = vmul.f32 %v169_v52, %v536_v6  ;;  %v180_v22 = vmul.f32 %v170_v54, %v538_v7  ;;  %v183_v27 = vmul.f32 %v169_v52, %v552_v10 }
 0x141   :  { %v194_v23 = vpop.permute.xlu1 %193  ;;  %v185_v31 = vmul.f32 %v169_v52, %v560_v12  ;;  %v187_v35 = vmul.f32 %v169_v52, %v568_v14 }
 0x142   :  { %v198_v24 = vmul.f32 %v194_v23, %v154_v21  ;;  %v200_v28 = vmul.f32 %v194_v23, %v156_v26  ;;  %v202_v32 = vmul.f32 %v194_v23, %v158_v30  ;;  %v204_v36 = vmul.f32 %v194_v23, %v160_v34 }
 0x143   :  { %v206_v40 = vmul.f32 %v194_v23, %v162_v38  ;;  %v208_v44 = vmul.f32 %v194_v23, %v164_v42  ;;  %v210_v48 = vmul.f32 %v194_v23, %v166_v47  ;;  %v212_v51 = vmul.f32 %v194_v23, %v168_v50 }
 0x144   :  { %231 = vrot.lane.b32.xlu1 %v198_v24, %s438_s22  ;;  %233 = vrot.lane.b32.xlu0 %v199_v25, %s438_s22  ;;  %v181_v23 = vmul.f32 %v169_v52, %v544_v8  ;;  %v182_v26 = vmul.f32 %v170_v54, %v546_v9  ;;  %v184_v30 = vmul.f32 %v170_v54, %v554_v11 }
 0x145   :  { %v186_v34 = vmul.f32 %v170_v54, %v562_v13  ;;  %v188_v38 = vmul.f32 %v170_v54, %v570_v15 }
 0x148   :  { %235 = vrot.lane.b32.xlu1 %v200_v28, %s438_s22  ;;  %237 = vrot.lane.b32.xlu0 %v201_v29, %s438_s22 }
 0x14c   :  { %239 = vrot.lane.b32.xlu1 %v202_v32, %s438_s22  ;;  %241 = vrot.lane.b32.xlu0 %v203_v33, %s438_s22 }
 0x150   :  { %243 = vrot.lane.b32.xlu1 %v204_v36, %s438_s22  ;;  %245 = vrot.lane.b32.xlu0 %v205_v37, %s438_s22 }
 0x154   :  { %247 = vrot.lane.b32.xlu1 %v206_v40, %s438_s22  ;;  %249 = vrot.lane.b32.xlu0 %v207_v41, %s438_s22 }
 0x158   :  { %251 = vrot.lane.b32.xlu1 %v208_v44, %s438_s22  ;;  %253 = vrot.lane.b32.xlu0 %v209_v45, %s438_s22 }
 0x15c   :  { %255 = vrot.lane.b32.xlu1 %v210_v48, %s438_s22  ;;  %257 = vrot.lane.b32.xlu0 %v211_v49, %s438_s22 }
 0x160   :  { %259 = vrot.lane.b32.xlu1 %v212_v51, %s438_s22 }
 0x1b2   :  { %v230_v55 = vpop.permute.xlu0 %229 }
 0x1b3   :  { %v277_v56 = vadd.f32 %v230_v55, %v173_v53 }
 0x1b5   :  { %294 = vst.msk [vmem:[#allocation8] sm:$0xff] %vm293_vm1, %v277_v56 }
 0x1b6   :  { %v232_v59 = vpop.permute.xlu1 %231  ;;  %v234_v60 = vpop.permute.xlu0 %233 }
 0x1b7   :  { %v278_v61 = vadd.f32 %v232_v59, %v174_v57  ;;  %v279_v62 = vadd.f32 %v234_v60, %v175_v58 }
 0x1b9   :  { %295 = vst.msk [vmem:[#allocation8 + $0x8] sm:$0xff] %vm293_vm1, %v278_v61  ;;  %296 = vst.msk [vmem:[#allocation8 + $0x10] sm:$0xff] %vm293_vm1, %v279_v62 }
 0x1ba   :  { %v236_v0 = vpop.permute.xlu1 %235  ;;  %v238_v17 = vpop.permute.xlu0 %237 }
 0x1bb   :  { %v280_v18 = vadd.f32 %v236_v0, %v176_v63  ;;  %v281_v2 = vadd.f32 %v238_v17, %v177_v16 }
 0x1bd   :  { %297 = vst.msk [vmem:[#allocation8 + $0x18] sm:$0xff] %vm293_vm1, %v280_v18  ;;  %298 = vst.msk [vmem:[#allocation8 + $0x20] sm:$0xff] %vm293_vm1, %v281_v2 }
 0x1be   :  { %v240_v20 = vpop.permute.xlu1 %239  ;;  %v242_v3 = vpop.permute.xlu0 %241 }
 0x1bf   :  { %v282_v21 = vadd.f32 %v240_v20, %v178_v1  ;;  %v283_v4 = vadd.f32 %v242_v3, %v179_v19 }
 0x1c1   :  { %299 = vst.msk [vmem:[#allocation8 + $0x28] sm:$0xff] %vm293_vm1, %v282_v21  ;;  %300 = vst.msk [vmem:[#allocation8 + $0x30] sm:$0xff] %vm293_vm1, %v283_v4 }
 0x1c2   :  { %v244_v24 = vpop.permute.xlu1 %243  ;;  %v246_v5 = vpop.permute.xlu0 %245 }
 0x1c3   :  { %v284_v25 = vadd.f32 %v244_v24, %v180_v22  ;;  %v285_v6 = vadd.f32 %v246_v5, %v181_v23 }
 0x1c5   :  { %301 = vst.msk [vmem:[#allocation8 + $0x38] sm:$0xff] %vm293_vm1, %v284_v25  ;;  %302 = vst.msk [vmem:[#allocation8 + $0x40] sm:$0xff] %vm293_vm1, %v285_v6 }
 0x1c6   :  { %v248_v28 = vpop.permute.xlu1 %247  ;;  %v250_v7 = vpop.permute.xlu0 %249 }
 0x1c7   :  { %v286_v29 = vadd.f32 %v248_v28, %v182_v26  ;;  %v287_v8 = vadd.f32 %v250_v7, %v183_v27 }
 0x1c9   :  { %303 = vst.msk [vmem:[#allocation8 + $0x48] sm:$0xff] %vm293_vm1, %v286_v29  ;;  %304 = vst.msk [vmem:[#allocation8 + $0x50] sm:$0xff] %vm293_vm1, %v287_v8 }
 0x1ca   :  { %v252_v32 = vpop.permute.xlu1 %251  ;;  %v254_v9 = vpop.permute.xlu0 %253 }
 0x1cb   :  { %v288_v33 = vadd.f32 %v252_v32, %v184_v30  ;;  %v289_v10 = vadd.f32 %v254_v9, %v185_v31 }
 0x1cd   :  { %305 = vst.msk [vmem:[#allocation8 + $0x58] sm:$0xff] %vm293_vm1, %v288_v33  ;;  %306 = vst.msk [vmem:[#allocation8 + $0x60] sm:$0xff] %vm293_vm1, %v289_v10 }
 0x1ce   :  { %v256_v36 = vpop.permute.xlu1 %255  ;;  %v258_v11 = vpop.permute.xlu0 %257 }
 0x1cf   :  { %v290_v37 = vadd.f32 %v256_v36, %v186_v34  ;;  %v291_v12 = vadd.f32 %v258_v11, %v187_v35 }
 0x1d1   :  { %307 = vst.msk [vmem:[#allocation8 + $0x68] sm:$0xff] %vm293_vm1, %v290_v37  ;;  %308 = vst.msk [vmem:[#allocation8 + $0x70] sm:$0xff] %vm293_vm1, %v291_v12 }
 0x1d2   :  { %v260_v39 = vpop.permute.xlu1 %259 }
 0x1d3   :  { %v292_v13 = vadd.f32 %v260_v39, %v188_v38 }
 0x1d5   :  { %309 = vst.msk [vmem:[#allocation8 + $0x78] sm:$0xff] %vm293_vm1, %v292_v13 }
 0x1d6   :  { %414 = shalt.err (!%p411_p0)
}
 0x1d7   :  { %s415_s30 = scalar_lea.hbm %s722_s3, 2048 }
 0x1d8   :  { %p416_p1 = scmp.ne.s32.totalorder %s722_s3, %s415_s30  ;;  %p419_p2 = scmp.lt.u32.totalorder %s415_s30, %s722_s3 }
 0x1da   :  { %p421_p3 = pnand %p419_p2, %p416_p1 }
 0x1dc   :  { %424 = shalt.err (!%p421_p3)
}
 0x1dd   :  { %321 = dma.vmem_to_hbm [thread:$0]  %s316_s26, 2048, %s722_s3, [#allocation4], %s433_s24, %s433_s24, %s434_s25  }
 0x1de   :  { %429 = dma.done.wait [#allocation4], 2048  }
 0x1df   :  { %430 = vsyncadd [#allocation4], 4294965248 }
 0x1e0   :  { %325 = vsyncpa [#allocation3], 1 }
 0x1e1   :  { %326 = vsyncpa [#allocation6], 1 }
 0x1e2   :  { %327 = vsyncpa [#allocation4], 1 }

</bundles_post_ra>
